<compile_context>
chip_gen: v5e
topology: v5e:2x2
jax: 0.10.0
libtpu: 0.0.40
codegen_flags: <defaults>
</compile_context>

<pallas_src>
import functools
import math

import jax
import jax.numpy as jnp
from jax.experimental import pallas as pl


def _peep_lstm_kernel(
    x_ref,      # (S*B, D)   time-major embedded inputs, row block t*B:(t+1)*B == timestep t
    wx_ref,     # (D, 4H)    fused input->gate weights, gate order [f, i, o, c]
    wh_ref,     # (H, 4H)    fused cell->gate weights, last H columns are zeros (c-gate)
    b_ref,      # (1, 4H)    fused gate biases [bf, bi, bo, bc]
    wp_ref,     # (H, C)     classifier weights
    bp_ref,     # (1, C)     classifier bias
    out_ref,    # (B, C)     log-softmax output
    *, seq, batch, hidden,
):
    # Hoisted input projection for ALL timesteps: one lane-dense MXU matmul.
    xw = jnp.dot(x_ref[...], wx_ref[...], preferred_element_type=jnp.float32) + b_ref[...]

    wh = wh_ref[...]
    c = jnp.zeros((batch, hidden), jnp.float32)
    h = jnp.zeros((batch, hidden), jnp.float32)

    # Recurrence: only the (B,H)@(H,4H) matmul + elementwise gating sit on the
    # serial critical path.  seq is small & static -> unroll at trace time so the
    # carries (c, h) live in vregs and all slices are static.
    for t in range(seq):
        g = xw[t * batch:(t + 1) * batch, :] + jnp.dot(
            c, wh, preferred_element_type=jnp.float32)          # (B, 4H)
        f_t = jax.nn.sigmoid(g[:, 0:hidden])
        i_t = jax.nn.sigmoid(g[:, hidden:2 * hidden])
        o_t = jax.nn.sigmoid(g[:, 2 * hidden:3 * hidden])
        g_t = jax.nn.sigmoid(g[:, 3 * hidden:4 * hidden])       # sigmoid(x Wcx + bc)
        c = g_t * i_t + c * f_t
        h = jnp.tanh(c) * o_t

    # Final projection + log-softmax.
    p = jnp.dot(h, wp_ref[...], preferred_element_type=jnp.float32) + bp_ref[...]
    m = jnp.max(p, axis=1, keepdims=True)
    lse = m + jnp.log(jnp.sum(jnp.exp(p - m), axis=1, keepdims=True))
    out_ref[...] = p - lse


def peep_lstm_forward(x, params, *, hidden_dim, num_classes):
    """x: int array (batch, seq, 1) of class indices (matches the PyTorch module)."""
    x_ids = x[..., 0].astype(jnp.int32)                      # (B, S)
    batch, seq = x_ids.shape

    # Embedding lookup (glue), then time-major rows: row block t holds timestep t.
    x_emb = params["emb"][x_ids]                              # (B, S, D)
    input_dim = x_emb.shape[-1]
    x_flat = jnp.transpose(x_emb, (1, 0, 2)).reshape(seq * batch, input_dim)

    H = hidden_dim
    # Fused, lane-dense gate weights (gate order [f, i, o, c]); the c-gate has no
    # recurrent (peephole) term, so its block of Wh_all is zero.
    wx_all = jnp.concatenate(
        [params["Wfx"].T, params["Wix"].T, params["Wox"].T, params["Wcx"].T], axis=1)
    wh_all = jnp.concatenate(
        [params["Wfh"].T, params["Wih"].T, params["Woh"].T,
         jnp.zeros((H, H), jnp.float32)], axis=1)
    b_all = jnp.concatenate(
        [params["bf"], params["bi"], params["bo"], params["bc"]]).reshape(1, 4 * H)
    wph = params["Wph"].T                                     # (H, C)
    bp = params["bp"].reshape(1, num_classes)                 # (1, C)

    kernel = functools.partial(
        _peep_lstm_kernel, seq=seq, batch=batch, hidden=H)

    # Single invocation (no grid): every operand is a whole-array VMEM block
    # (total footprint ~30 KiB), so no per-step pipelining is needed.
    return pl.pallas_call(
        kernel,
        out_shape=jax.ShapeDtypeStruct((batch, num_classes), jnp.float32),
    )(x_flat, wx_all, wh_all, b_all, wph, bp)


def reference_forward(x, params):
    """Pure-JAX reference matching the PyTorch forward semantics."""
    x_ids = x[..., 0].astype(jnp.int32)
    batch, seq = x_ids.shape
    hidden = params["Wcx"].shape[0]
    x_emb = params["emb"][x_ids]                              # (B, S, D)
    c = jnp.zeros((batch, hidden), jnp.float32)
    h = jnp.zeros((batch, hidden), jnp.float32)
    for t in range(seq):
        xt = x_emb[:, t, :]
        f = jax.nn.sigmoid(xt @ params["Wfx"].T + c @ params["Wfh"].T + params["bf"])
        i = jax.nn.sigmoid(xt @ params["Wix"].T + c @ params["Wih"].T + params["bi"])
        o = jax.nn.sigmoid(xt @ params["Wox"].T + c @ params["Woh"].T + params["bo"])
        c = jax.nn.sigmoid(xt @ params["Wcx"].T + params["bc"]) * i + c * f
        h = jnp.tanh(c) * o
    p = h @ params["Wph"].T + params["bp"]
    return jnp.log(jax.nn.softmax(p, axis=1))


def init_params(key, *, input_dim, hidden_dim, num_classes):
    ks = jax.random.split(key, 9)
    n = jax.random.normal
    return {
        "emb": n(ks[0], (num_classes, input_dim), jnp.float32),
        "Wcx": n(ks[1], (hidden_dim, input_dim), jnp.float32) * math.sqrt(2 / input_dim),
        "bc": jnp.zeros((hidden_dim,), jnp.float32),
        "Wix": n(ks[2], (hidden_dim, input_dim), jnp.float32) * math.sqrt(2 / input_dim),
        "Wih": n(ks[3], (hidden_dim, hidden_dim), jnp.float32) * math.sqrt(2 / hidden_dim),
        "bi": jnp.zeros((hidden_dim,), jnp.float32),
        "Wfx": n(ks[4], (hidden_dim, input_dim), jnp.float32) * math.sqrt(2 / input_dim),
        "Wfh": n(ks[5], (hidden_dim, hidden_dim), jnp.float32) * math.sqrt(2 / hidden_dim),
        "bf": jnp.zeros((hidden_dim,), jnp.float32),
        "Wox": n(ks[6], (hidden_dim, input_dim), jnp.float32) * math.sqrt(2 / input_dim),
        "Woh": n(ks[7], (hidden_dim, hidden_dim), jnp.float32) * math.sqrt(2 / hidden_dim),
        "bo": jnp.zeros((hidden_dim,), jnp.float32),
        "Wph": n(ks[8], (num_classes, hidden_dim), jnp.float32) * math.sqrt(2 / hidden_dim),
        "bp": jnp.zeros((num_classes,), jnp.float32),
    }


if __name__ == "__main__":
    batch = 8
    seq_length = 8
    input_dim = 8
    hidden_dim = 32      # 4H = 128 -> lane-dense fused gate matmul
    num_classes = 10

    key = jax.random.PRNGKey(0)
    pkey, xkey = jax.random.split(key)
    params = init_params(pkey, input_dim=input_dim, hidden_dim=hidden_dim,
                         num_classes=num_classes)

    # PyTorch forward indexes x[:, t, :] -> (batch, 1) and embeds it, so the
    # input is integer class indices of shape (batch, seq, 1).
    x = jax.random.randint(xkey, (batch, seq_length, 1), 0, num_classes, dtype=jnp.int32)

    out = peep_lstm_forward(x, params, hidden_dim=hidden_dim, num_classes=num_classes)
    out = jax.block_until_ready(out)

    ref = reference_forward(x, params)
    assert out.shape == (batch, num_classes)
    assert jnp.allclose(out, ref, atol=1e-3, rtol=1e-3), (
        f"max abs err {jnp.max(jnp.abs(out - ref))}")

    print("KERNEL_OK")
</pallas_src>

<mosaic_0001>
module attributes {stable_mosaic.version = 11 : i64} {
  func.func @_peep_lstm_kernel(%arg0: memref<64x8xf32, #tpu.memory_space<vmem>>, %arg1: memref<8x128xf32, #tpu.memory_space<vmem>>, %arg2: memref<32x128xf32, #tpu.memory_space<vmem>>, %arg3: memref<1x128xf32, #tpu.memory_space<vmem>>, %arg4: memref<32x10xf32, #tpu.memory_space<vmem>>, %arg5: memref<1x10xf32, #tpu.memory_space<vmem>>, %arg6: memref<8x10xf32, #tpu.memory_space<vmem>>) attributes {dimension_semantics = [], scalar_prefetch = 0 : i64, scratch_operands = 0 : i64, tpu.core_type = #tpu.core_type<tc>} {
    %c0 = arith.constant 0 : index
    %c0_0 = arith.constant 0 : index
    %0 = vector.load %arg0[%c0, %c0_0] : memref<64x8xf32, #tpu.memory_space<vmem>>, vector<64x8xf32>
    %c0_1 = arith.constant 0 : index
    %c0_2 = arith.constant 0 : index
    %1 = vector.load %arg1[%c0_1, %c0_2] : memref<8x128xf32, #tpu.memory_space<vmem>>, vector<8x128xf32>
    %cst = arith.constant dense<0.000000e+00> : vector<64x128xf32>
    %2 = tpu.matmul %0, %1, %cst {dimension_numbers = #tpu.dot_dimension_numbers<[1], [0], [0], [1], [0, 0, 1, 1], [], []>} : vector<64x8xf32>, vector<8x128xf32>, vector<64x128xf32> -> vector<64x128xf32>
    %c0_3 = arith.constant 0 : index
    %c0_4 = arith.constant 0 : index
    %3 = vector.load %arg3[%c0_3, %c0_4] : memref<1x128xf32, #tpu.memory_space<vmem>>, vector<1x128xf32>
    %4 = vector.broadcast %3 : vector<1x128xf32> to vector<64x128xf32>
    %5 = arith.addf %2, %4 : vector<64x128xf32>
    %c0_5 = arith.constant 0 : index
    %c0_6 = arith.constant 0 : index
    %6 = vector.load %arg2[%c0_5, %c0_6] : memref<32x128xf32, #tpu.memory_space<vmem>>, vector<32x128xf32>
    %cst_7 = arith.constant 0.000000e+00 : f32
    %7 = vector.broadcast %cst_7 : f32 to vector<8x32xf32>
    %8 = vector.extract_strided_slice %5 {offsets = [0, 0], sizes = [8, 128], strides = [1, 1]} : vector<64x128xf32> to vector<8x128xf32>
    %cst_8 = arith.constant dense<0.000000e+00> : vector<8x128xf32>
    %9 = tpu.matmul %7, %6, %cst_8 {dimension_numbers = #tpu.dot_dimension_numbers<[1], [0], [0], [1], [0, 0, 1, 1], [], []>} : vector<8x32xf32>, vector<32x128xf32>, vector<8x128xf32> -> vector<8x128xf32>
    %10 = arith.addf %8, %9 : vector<8x128xf32>
    %11 = vector.extract_strided_slice %10 {offsets = [0, 0], sizes = [8, 32], strides = [1, 1]} : vector<8x128xf32> to vector<8x32xf32>
    %12 = arith.negf %11 : vector<8x32xf32>
    %13 = math.exp %12 : vector<8x32xf32>
    %cst_9 = arith.constant 1.000000e+00 : f32
    %14 = vector.broadcast %cst_9 : f32 to vector<8x32xf32>
    %15 = arith.addf %14, %13 : vector<8x32xf32>
    %16 = arith.divf %14, %15 : vector<8x32xf32>
    %17 = vector.extract_strided_slice %10 {offsets = [0, 32], sizes = [8, 32], strides = [1, 1]} : vector<8x128xf32> to vector<8x32xf32>
    %18 = arith.negf %17 : vector<8x32xf32>
    %19 = math.exp %18 : vector<8x32xf32>
    %cst_10 = arith.constant 1.000000e+00 : f32
    %20 = vector.broadcast %cst_10 : f32 to vector<8x32xf32>
    %21 = arith.addf %20, %19 : vector<8x32xf32>
    %22 = arith.divf %20, %21 : vector<8x32xf32>
    %23 = vector.extract_strided_slice %10 {offsets = [0, 96], sizes = [8, 32], strides = [1, 1]} : vector<8x128xf32> to vector<8x32xf32>
    %24 = arith.negf %23 : vector<8x32xf32>
    %25 = math.exp %24 : vector<8x32xf32>
    %cst_11 = arith.constant 1.000000e+00 : f32
    %26 = vector.broadcast %cst_11 : f32 to vector<8x32xf32>
    %27 = arith.addf %26, %25 : vector<8x32xf32>
    %28 = arith.divf %26, %27 : vector<8x32xf32>
    %29 = arith.mulf %28, %22 : vector<8x32xf32>
    %30 = arith.mulf %7, %16 : vector<8x32xf32>
    %31 = arith.addf %29, %30 : vector<8x32xf32>
    %32 = vector.extract_strided_slice %5 {offsets = [8, 0], sizes = [8, 128], strides = [1, 1]} : vector<64x128xf32> to vector<8x128xf32>
    %cst_12 = arith.constant dense<0.000000e+00> : vector<8x128xf32>
    %33 = tpu.matmul %31, %6, %cst_12 {dimension_numbers = #tpu.dot_dimension_numbers<[1], [0], [0], [1], [0, 0, 1, 1], [], []>} : vector<8x32xf32>, vector<32x128xf32>, vector<8x128xf32> -> vector<8x128xf32>
    %34 = arith.addf %32, %33 : vector<8x128xf32>
    %35 = vector.extract_strided_slice %34 {offsets = [0, 0], sizes = [8, 32], strides = [1, 1]} : vector<8x128xf32> to vector<8x32xf32>
    %36 = arith.negf %35 : vector<8x32xf32>
    %37 = math.exp %36 : vector<8x32xf32>
    %cst_13 = arith.constant 1.000000e+00 : f32
    %38 = vector.broadcast %cst_13 : f32 to vector<8x32xf32>
    %39 = arith.addf %38, %37 : vector<8x32xf32>
    %40 = arith.divf %38, %39 : vector<8x32xf32>
    %41 = vector.extract_strided_slice %34 {offsets = [0, 32], sizes = [8, 32], strides = [1, 1]} : vector<8x128xf32> to vector<8x32xf32>
    %42 = arith.negf %41 : vector<8x32xf32>
    %43 = math.exp %42 : vector<8x32xf32>
    %cst_14 = arith.constant 1.000000e+00 : f32
    %44 = vector.broadcast %cst_14 : f32 to vector<8x32xf32>
    %45 = arith.addf %44, %43 : vector<8x32xf32>
    %46 = arith.divf %44, %45 : vector<8x32xf32>
    %47 = vector.extract_strided_slice %34 {offsets = [0, 96], sizes = [8, 32], strides = [1, 1]} : vector<8x128xf32> to vector<8x32xf32>
    %48 = arith.negf %47 : vector<8x32xf32>
    %49 = math.exp %48 : vector<8x32xf32>
    %cst_15 = arith.constant 1.000000e+00 : f32
    %50 = vector.broadcast %cst_15 : f32 to vector<8x32xf32>
    %51 = arith.addf %50, %49 : vector<8x32xf32>
    %52 = arith.divf %50, %51 : vector<8x32xf32>
    %53 = arith.mulf %52, %46 : vector<8x32xf32>
    %54 = arith.mulf %31, %40 : vector<8x32xf32>
    %55 = arith.addf %53, %54 : vector<8x32xf32>
    %56 = vector.extract_strided_slice %5 {offsets = [16, 0], sizes = [8, 128], strides = [1, 1]} : vector<64x128xf32> to vector<8x128xf32>
    %cst_16 = arith.constant dense<0.000000e+00> : vector<8x128xf32>
    %57 = tpu.matmul %55, %6, %cst_16 {dimension_numbers = #tpu.dot_dimension_numbers<[1], [0], [0], [1], [0, 0, 1, 1], [], []>} : vector<8x32xf32>, vector<32x128xf32>, vector<8x128xf32> -> vector<8x128xf32>
    %58 = arith.addf %56, %57 : vector<8x128xf32>
    %59 = vector.extract_strided_slice %58 {offsets = [0, 0], sizes = [8, 32], strides = [1, 1]} : vector<8x128xf32> to vector<8x32xf32>
    %60 = arith.negf %59 : vector<8x32xf32>
    %61 = math.exp %60 : vector<8x32xf32>
    %cst_17 = arith.constant 1.000000e+00 : f32
    %62 = vector.broadcast %cst_17 : f32 to vector<8x32xf32>
    %63 = arith.addf %62, %61 : vector<8x32xf32>
    %64 = arith.divf %62, %63 : vector<8x32xf32>
    %65 = vector.extract_strided_slice %58 {offsets = [0, 32], sizes = [8, 32], strides = [1, 1]} : vector<8x128xf32> to vector<8x32xf32>
    %66 = arith.negf %65 : vector<8x32xf32>
    %67 = math.exp %66 : vector<8x32xf32>
    %cst_18 = arith.constant 1.000000e+00 : f32
    %68 = vector.broadcast %cst_18 : f32 to vector<8x32xf32>
    %69 = arith.addf %68, %67 : vector<8x32xf32>
    %70 = arith.divf %68, %69 : vector<8x32xf32>
    %71 = vector.extract_strided_slice %58 {offsets = [0, 96], sizes = [8, 32], strides = [1, 1]} : vector<8x128xf32> to vector<8x32xf32>
    %72 = arith.negf %71 : vector<8x32xf32>
    %73 = math.exp %72 : vector<8x32xf32>
    %cst_19 = arith.constant 1.000000e+00 : f32
    %74 = vector.broadcast %cst_19 : f32 to vector<8x32xf32>
    %75 = arith.addf %74, %73 : vector<8x32xf32>
    %76 = arith.divf %74, %75 : vector<8x32xf32>
    %77 = arith.mulf %76, %70 : vector<8x32xf32>
    %78 = arith.mulf %55, %64 : vector<8x32xf32>
    %79 = arith.addf %77, %78 : vector<8x32xf32>
    %80 = vector.extract_strided_slice %5 {offsets = [24, 0], sizes = [8, 128], strides = [1, 1]} : vector<64x128xf32> to vector<8x128xf32>
    %cst_20 = arith.constant dense<0.000000e+00> : vector<8x128xf32>
    %81 = tpu.matmul %79, %6, %cst_20 {dimension_numbers = #tpu.dot_dimension_numbers<[1], [0], [0], [1], [0, 0, 1, 1], [], []>} : vector<8x32xf32>, vector<32x128xf32>, vector<8x128xf32> -> vector<8x128xf32>
    %82 = arith.addf %80, %81 : vector<8x128xf32>
    %83 = vector.extract_strided_slice %82 {offsets = [0, 0], sizes = [8, 32], strides = [1, 1]} : vector<8x128xf32> to vector<8x32xf32>
    %84 = arith.negf %83 : vector<8x32xf32>
    %85 = math.exp %84 : vector<8x32xf32>
    %cst_21 = arith.constant 1.000000e+00 : f32
    %86 = vector.broadcast %cst_21 : f32 to vector<8x32xf32>
    %87 = arith.addf %86, %85 : vector<8x32xf32>
    %88 = arith.divf %86, %87 : vector<8x32xf32>
    %89 = vector.extract_strided_slice %82 {offsets = [0, 32], sizes = [8, 32], strides = [1, 1]} : vector<8x128xf32> to vector<8x32xf32>
    %90 = arith.negf %89 : vector<8x32xf32>
    %91 = math.exp %90 : vector<8x32xf32>
    %cst_22 = arith.constant 1.000000e+00 : f32
    %92 = vector.broadcast %cst_22 : f32 to vector<8x32xf32>
    %93 = arith.addf %92, %91 : vector<8x32xf32>
    %94 = arith.divf %92, %93 : vector<8x32xf32>
    %95 = vector.extract_strided_slice %82 {offsets = [0, 96], sizes = [8, 32], strides = [1, 1]} : vector<8x128xf32> to vector<8x32xf32>
    %96 = arith.negf %95 : vector<8x32xf32>
    %97 = math.exp %96 : vector<8x32xf32>
    %cst_23 = arith.constant 1.000000e+00 : f32
    %98 = vector.broadcast %cst_23 : f32 to vector<8x32xf32>
    %99 = arith.addf %98, %97 : vector<8x32xf32>
    %100 = arith.divf %98, %99 : vector<8x32xf32>
    %101 = arith.mulf %100, %94 : vector<8x32xf32>
    %102 = arith.mulf %79, %88 : vector<8x32xf32>
    %103 = arith.addf %101, %102 : vector<8x32xf32>
    %104 = vector.extract_strided_slice %5 {offsets = [32, 0], sizes = [8, 128], strides = [1, 1]} : vector<64x128xf32> to vector<8x128xf32>
    %cst_24 = arith.constant dense<0.000000e+00> : vector<8x128xf32>
    %105 = tpu.matmul %103, %6, %cst_24 {dimension_numbers = #tpu.dot_dimension_numbers<[1], [0], [0], [1], [0, 0, 1, 1], [], []>} : vector<8x32xf32>, vector<32x128xf32>, vector<8x128xf32> -> vector<8x128xf32>
    %106 = arith.addf %104, %105 : vector<8x128xf32>
    %107 = vector.extract_strided_slice %106 {offsets = [0, 0], sizes = [8, 32], strides = [1, 1]} : vector<8x128xf32> to vector<8x32xf32>
    %108 = arith.negf %107 : vector<8x32xf32>
    %109 = math.exp %108 : vector<8x32xf32>
    %cst_25 = arith.constant 1.000000e+00 : f32
    %110 = vector.broadcast %cst_25 : f32 to vector<8x32xf32>
    %111 = arith.addf %110, %109 : vector<8x32xf32>
    %112 = arith.divf %110, %111 : vector<8x32xf32>
    %113 = vector.extract_strided_slice %106 {offsets = [0, 32], sizes = [8, 32], strides = [1, 1]} : vector<8x128xf32> to vector<8x32xf32>
    %114 = arith.negf %113 : vector<8x32xf32>
    %115 = math.exp %114 : vector<8x32xf32>
    %cst_26 = arith.constant 1.000000e+00 : f32
    %116 = vector.broadcast %cst_26 : f32 to vector<8x32xf32>
    %117 = arith.addf %116, %115 : vector<8x32xf32>
    %118 = arith.divf %116, %117 : vector<8x32xf32>
    %119 = vector.extract_strided_slice %106 {offsets = [0, 96], sizes = [8, 32], strides = [1, 1]} : vector<8x128xf32> to vector<8x32xf32>
    %120 = arith.negf %119 : vector<8x32xf32>
    %121 = math.exp %120 : vector<8x32xf32>
    %cst_27 = arith.constant 1.000000e+00 : f32
    %122 = vector.broadcast %cst_27 : f32 to vector<8x32xf32>
    %123 = arith.addf %122, %121 : vector<8x32xf32>
    %124 = arith.divf %122, %123 : vector<8x32xf32>
    %125 = arith.mulf %124, %118 : vector<8x32xf32>
    %126 = arith.mulf %103, %112 : vector<8x32xf32>
    %127 = arith.addf %125, %126 : vector<8x32xf32>
    %128 = vector.extract_strided_slice %5 {offsets = [40, 0], sizes = [8, 128], strides = [1, 1]} : vector<64x128xf32> to vector<8x128xf32>
    %cst_28 = arith.constant dense<0.000000e+00> : vector<8x128xf32>
    %129 = tpu.matmul %127, %6, %cst_28 {dimension_numbers = #tpu.dot_dimension_numbers<[1], [0], [0], [1], [0, 0, 1, 1], [], []>} : vector<8x32xf32>, vector<32x128xf32>, vector<8x128xf32> -> vector<8x128xf32>
    %130 = arith.addf %128, %129 : vector<8x128xf32>
    %131 = vector.extract_strided_slice %130 {offsets = [0, 0], sizes = [8, 32], strides = [1, 1]} : vector<8x128xf32> to vector<8x32xf32>
    %132 = arith.negf %131 : vector<8x32xf32>
    %133 = math.exp %132 : vector<8x32xf32>
    %cst_29 = arith.constant 1.000000e+00 : f32
    %134 = vector.broadcast %cst_29 : f32 to vector<8x32xf32>
    %135 = arith.addf %134, %133 : vector<8x32xf32>
    %136 = arith.divf %134, %135 : vector<8x32xf32>
    %137 = vector.extract_strided_slice %130 {offsets = [0, 32], sizes = [8, 32], strides = [1, 1]} : vector<8x128xf32> to vector<8x32xf32>
    %138 = arith.negf %137 : vector<8x32xf32>
    %139 = math.exp %138 : vector<8x32xf32>
    %cst_30 = arith.constant 1.000000e+00 : f32
    %140 = vector.broadcast %cst_30 : f32 to vector<8x32xf32>
    %141 = arith.addf %140, %139 : vector<8x32xf32>
    %142 = arith.divf %140, %141 : vector<8x32xf32>
    %143 = vector.extract_strided_slice %130 {offsets = [0, 96], sizes = [8, 32], strides = [1, 1]} : vector<8x128xf32> to vector<8x32xf32>
    %144 = arith.negf %143 : vector<8x32xf32>
    %145 = math.exp %144 : vector<8x32xf32>
    %cst_31 = arith.constant 1.000000e+00 : f32
    %146 = vector.broadcast %cst_31 : f32 to vector<8x32xf32>
    %147 = arith.addf %146, %145 : vector<8x32xf32>
    %148 = arith.divf %146, %147 : vector<8x32xf32>
    %149 = arith.mulf %148, %142 : vector<8x32xf32>
    %150 = arith.mulf %127, %136 : vector<8x32xf32>
    %151 = arith.addf %149, %150 : vector<8x32xf32>
    %152 = vector.extract_strided_slice %5 {offsets = [48, 0], sizes = [8, 128], strides = [1, 1]} : vector<64x128xf32> to vector<8x128xf32>
    %cst_32 = arith.constant dense<0.000000e+00> : vector<8x128xf32>
    %153 = tpu.matmul %151, %6, %cst_32 {dimension_numbers = #tpu.dot_dimension_numbers<[1], [0], [0], [1], [0, 0, 1, 1], [], []>} : vector<8x32xf32>, vector<32x128xf32>, vector<8x128xf32> -> vector<8x128xf32>
    %154 = arith.addf %152, %153 : vector<8x128xf32>
    %155 = vector.extract_strided_slice %154 {offsets = [0, 0], sizes = [8, 32], strides = [1, 1]} : vector<8x128xf32> to vector<8x32xf32>
    %156 = arith.negf %155 : vector<8x32xf32>
    %157 = math.exp %156 : vector<8x32xf32>
    %cst_33 = arith.constant 1.000000e+00 : f32
    %158 = vector.broadcast %cst_33 : f32 to vector<8x32xf32>
    %159 = arith.addf %158, %157 : vector<8x32xf32>
    %160 = arith.divf %158, %159 : vector<8x32xf32>
    %161 = vector.extract_strided_slice %154 {offsets = [0, 32], sizes = [8, 32], strides = [1, 1]} : vector<8x128xf32> to vector<8x32xf32>
    %162 = arith.negf %161 : vector<8x32xf32>
    %163 = math.exp %162 : vector<8x32xf32>
    %cst_34 = arith.constant 1.000000e+00 : f32
    %164 = vector.broadcast %cst_34 : f32 to vector<8x32xf32>
    %165 = arith.addf %164, %163 : vector<8x32xf32>
    %166 = arith.divf %164, %165 : vector<8x32xf32>
    %167 = vector.extract_strided_slice %154 {offsets = [0, 96], sizes = [8, 32], strides = [1, 1]} : vector<8x128xf32> to vector<8x32xf32>
    %168 = arith.negf %167 : vector<8x32xf32>
    %169 = math.exp %168 : vector<8x32xf32>
    %cst_35 = arith.constant 1.000000e+00 : f32
    %170 = vector.broadcast %cst_35 : f32 to vector<8x32xf32>
    %171 = arith.addf %170, %169 : vector<8x32xf32>
    %172 = arith.divf %170, %171 : vector<8x32xf32>
    %173 = arith.mulf %172, %166 : vector<8x32xf32>
    %174 = arith.mulf %151, %160 : vector<8x32xf32>
    %175 = arith.addf %173, %174 : vector<8x32xf32>
    %176 = vector.extract_strided_slice %5 {offsets = [56, 0], sizes = [8, 128], strides = [1, 1]} : vector<64x128xf32> to vector<8x128xf32>
    %cst_36 = arith.constant dense<0.000000e+00> : vector<8x128xf32>
    %177 = tpu.matmul %175, %6, %cst_36 {dimension_numbers = #tpu.dot_dimension_numbers<[1], [0], [0], [1], [0, 0, 1, 1], [], []>} : vector<8x32xf32>, vector<32x128xf32>, vector<8x128xf32> -> vector<8x128xf32>
    %178 = arith.addf %176, %177 : vector<8x128xf32>
    %179 = vector.extract_strided_slice %178 {offsets = [0, 0], sizes = [8, 32], strides = [1, 1]} : vector<8x128xf32> to vector<8x32xf32>
    %180 = arith.negf %179 : vector<8x32xf32>
    %181 = math.exp %180 : vector<8x32xf32>
    %cst_37 = arith.constant 1.000000e+00 : f32
    %182 = vector.broadcast %cst_37 : f32 to vector<8x32xf32>
    %183 = arith.addf %182, %181 : vector<8x32xf32>
    %184 = arith.divf %182, %183 : vector<8x32xf32>
    %185 = vector.extract_strided_slice %178 {offsets = [0, 32], sizes = [8, 32], strides = [1, 1]} : vector<8x128xf32> to vector<8x32xf32>
    %186 = arith.negf %185 : vector<8x32xf32>
    %187 = math.exp %186 : vector<8x32xf32>
    %cst_38 = arith.constant 1.000000e+00 : f32
    %188 = vector.broadcast %cst_38 : f32 to vector<8x32xf32>
    %189 = arith.addf %188, %187 : vector<8x32xf32>
    %190 = arith.divf %188, %189 : vector<8x32xf32>
    %191 = vector.extract_strided_slice %178 {offsets = [0, 64], sizes = [8, 32], strides = [1, 1]} : vector<8x128xf32> to vector<8x32xf32>
    %192 = arith.negf %191 : vector<8x32xf32>
    %193 = math.exp %192 : vector<8x32xf32>
    %cst_39 = arith.constant 1.000000e+00 : f32
    %194 = vector.broadcast %cst_39 : f32 to vector<8x32xf32>
    %195 = arith.addf %194, %193 : vector<8x32xf32>
    %196 = arith.divf %194, %195 : vector<8x32xf32>
    %197 = vector.extract_strided_slice %178 {offsets = [0, 96], sizes = [8, 32], strides = [1, 1]} : vector<8x128xf32> to vector<8x32xf32>
    %198 = arith.negf %197 : vector<8x32xf32>
    %199 = math.exp %198 : vector<8x32xf32>
    %cst_40 = arith.constant 1.000000e+00 : f32
    %200 = vector.broadcast %cst_40 : f32 to vector<8x32xf32>
    %201 = arith.addf %200, %199 : vector<8x32xf32>
    %202 = arith.divf %200, %201 : vector<8x32xf32>
    %203 = arith.mulf %202, %190 : vector<8x32xf32>
    %204 = arith.mulf %175, %184 : vector<8x32xf32>
    %205 = arith.addf %203, %204 : vector<8x32xf32>
    %206 = math.tanh %205 : vector<8x32xf32>
    %207 = arith.mulf %206, %196 : vector<8x32xf32>
    %c0_41 = arith.constant 0 : index
    %c0_42 = arith.constant 0 : index
    %208 = vector.load %arg4[%c0_41, %c0_42] : memref<32x10xf32, #tpu.memory_space<vmem>>, vector<32x10xf32>
    %cst_43 = arith.constant dense<0.000000e+00> : vector<8x10xf32>
    %209 = tpu.matmul %207, %208, %cst_43 {dimension_numbers = #tpu.dot_dimension_numbers<[1], [0], [0], [1], [0, 0, 1, 1], [], []>} : vector<8x32xf32>, vector<32x10xf32>, vector<8x10xf32> -> vector<8x10xf32>
    %c0_44 = arith.constant 0 : index
    %c0_45 = arith.constant 0 : index
    %210 = vector.load %arg5[%c0_44, %c0_45] : memref<1x10xf32, #tpu.memory_space<vmem>>, vector<1x10xf32>
    %211 = vector.broadcast %210 : vector<1x10xf32> to vector<8x10xf32>
    %212 = arith.addf %209, %211 : vector<8x10xf32>
    %cst_46 = arith.constant dense<0xFF800000> : vector<8xf32>
    %213 = vector.multi_reduction <maximumf>, %212, %cst_46 [1] : vector<8x10xf32> to vector<8xf32>
    %214 = vector.shape_cast %213 : vector<8xf32> to vector<8x1xf32>
    %215 = vector.broadcast %214 : vector<8x1xf32> to vector<8x10xf32>
    %216 = arith.subf %212, %215 : vector<8x10xf32>
    %217 = math.exp %216 : vector<8x10xf32>
    %cst_47 = arith.constant dense<0.000000e+00> : vector<8xf32>
    %218 = vector.multi_reduction <add>, %217, %cst_47 [1] : vector<8x10xf32> to vector<8xf32>
    %219 = vector.shape_cast %218 : vector<8xf32> to vector<8x1xf32>
    %220 = math.log %219 : vector<8x1xf32>
    %221 = arith.addf %214, %220 : vector<8x1xf32>
    %222 = vector.broadcast %221 : vector<8x1xf32> to vector<8x10xf32>
    %223 = arith.subf %212, %222 : vector<8x10xf32>
    %c0_48 = arith.constant 0 : index
    %c0_49 = arith.constant 0 : index
    %224 = vector.load %arg6[%c0_48, %c0_49] : memref<8x10xf32, #tpu.memory_space<vmem>>, vector<8x10xf32>
    tpu.vector_store %arg6[%c0_48, %c0_49], %223 {strides = array<i32>} : memref<8x10xf32, #tpu.memory_space<vmem>>, vector<8x10xf32>,
    return
  }
}

</mosaic_0001>

<bundles_post_ra>
// kernel: tpu_custom_call.1
= control target key start
LH: loop header
LB: loop body
LE: loop exit
PB: predicated region body
PF: predicated region fallthrough
CT: control target
= control target key end

     0   :  { %vm37_vm0 = vcmask 64512   ;;  %s916_s0 = inlined_call_operand.vmem [shape: f32[64,8], index: 0, kind: input, shape index: {}]   ;;  %s917_s1 = inlined_call_operand.vmem [shape: f32[8,128], index: 1, kind: input, shape index: {}]   ;;  %s918_s2 = inlined_call_operand.vmem [shape: f32[32,128], index: 2, kind: input, shape index: {}]   ;;  %s919_s3 = inlined_call_operand.vmem [shape: f32[1,128], index: 3, kind: input, shape index: {}]   ;;  %s920_s4 = inlined_call_operand.vmem [shape: f32[32,10], index: 4, kind: input, shape index: {}]   ;;  %s921_s5 = inlined_call_operand.vmem [shape: f32[1,10], index: 5, kind: input, shape index: {}]   ;;  %s922_s6 = inlined_call_operand.hbm [shape: f32[8,10], index: 6, kind: output, shape index: {}]  }
   0x1   :  { %v32_v0 = vld [vmem:[%s917_s1] sm:$0xff]  ;;  %v29_v1 = vld [vmem:[%s916_s0 + $0x28] sm:$0xff]  ;;  %v762_v2 = vld [vmem:[%s918_s2 + $0x18] sm:$0xff] }
   0x2   :  { %640 = vmatpush.msra.mxu1 %v32_v0  ;;  %77 = vmatpush.msra.mxu0 %v32_v0  ;;  %v24_v3 = vld [vmem:[%s916_s0] sm:$0xff]  ;;  %v771_v4 = vld [vmem:[%s918_s2 + $0x10] sm:$0xff] }
   0x3   :  { %621 = vmatmul.msk.f32.vlgmr.msra.gmra.mxu1 %vm37_vm0, %v29_v1  ;;  %616 = vmatmul.msk.f32.vlgmr.msra.gmra.mxu0 %vm37_vm0, %v24_v3 }
   0x4   :  { %123 = vmatpush.msrb.mxu1 %v762_v2  ;;  %641 = vmatpush.msra.mxu2 %v32_v0 }
   0x5   :  { %11 = vsyncpa [#allocation3], 0  ;;  %v778_v5 = vld [vmem:[%s918_s2 + $0x8] sm:$0xff]  ;;  %234 = vmatpush.msra.mxu3 %v762_v2  ;;  %v786_v6 = vld [vmem:[%s918_s2] sm:$0xff]  ;;  %v713_v7 = vmov 0.0   ;;  %s715_s11 = smov 96  }
   0x6   :  { %179 = vmatpush.msrb.mxu2 %v762_v2  ;;  %124 = vmatpush.msrb.mxu1 %v771_v4  ;;  %v813_v10 = vld [vmem:[%s919_s3] ss:$0 sm:$0xff]  ;;  %s714_s3 = smov 64   ;;  %v30_v28 = vld [vmem:[%s916_s0 + $0x30] sm:$0xff]  ;;  %v31_v29 = vld [vmem:[%s916_s0 + $0x38] sm:$0xff]  ;;  %s716_s16 = smov 32  }
   0x7   :  { %235 = vmatpush.msra.mxu3 %v771_v4  ;;  %622 = vmatmul.msk.f32.vlgmr.msra.gmra.mxu2 %vm37_vm0, %v30_v28  ;;  %v25_v34 = vld [vmem:[%s916_s0 + $0x8] sm:$0xff]  ;;  %vm107_vm5 = vcmask 261120   ;;  %v26_v60 = vld [vmem:[%s916_s0 + $0x10] sm:$0xff]  ;;  %s607_s10 = sshll.u32 %s922_s6, 4  ;;  %s608_s10 = int_to_ptr.hbm [resolvable:$true] %s607_s10 }
   0x8   :  { %180 = vmatpush.msrb.mxu2 %v771_v4  ;;  %125 = vmatpush.msrb.mxu1 %v778_v5 }
   0x9   :  { %236 = vmatpush.msra.mxu3 %v778_v5 }
   0xa   :  { %181 = vmatpush.msrb.mxu2 %v778_v5  ;;  %126 = vmatpush.msrb.mxu1 %v786_v6 }
   0xb   :  { %127 = vmatmul.f32.vlgmr.msrb.gmra.mxu1 %v713_v7  ;;  %237 = vmatpush.msra.mxu3 %v786_v6 }
   0xc   :  { %182 = vmatpush.msrb.mxu2 %v786_v6  ;;  %289 = vmatpush.msra.mxu1 %v762_v2 }
   0xd   :  { %399 = vmatpush.msrb.mxu3 %v762_v2  ;;  %617 = vmatmul.msk.f32.gmra.mxu0 %vm37_vm0, %v25_v34 }
   0xe   :  { %290 = vmatpush.msra.mxu1 %v771_v4  ;;  %344 = vmatpush.msra.mxu2 %v762_v2 }
   0xf   :  { %400 = vmatpush.msrb.mxu3 %v771_v4  ;;  %623 = vmatmul.msk.f32.gmra.mxu2 %vm37_vm0, %v31_v29 }
  0x10   :  { %291 = vmatpush.msra.mxu1 %v778_v5  ;;  %345 = vmatpush.msra.mxu2 %v771_v4 }
  0x11   :  { %401 = vmatpush.msrb.mxu3 %v778_v5 }
  0x12   :  { %292 = vmatpush.msra.mxu1 %v786_v6  ;;  %346 = vmatpush.msra.mxu2 %v778_v5 }
  0x13   :  { %402 = vmatpush.msrb.mxu3 %v786_v6 }
  0x14   :  { %454 = vmatpush.msrb.mxu1 %v762_v2  ;;  %347 = vmatpush.msra.mxu2 %v786_v6 }
  0x15   :  { %618 = vmatmul.msk.f32.gmra.mxu0 %vm37_vm0, %v26_v60 }
  0x16   :  { %455 = vmatpush.msrb.mxu1 %v771_v4 }
  0x18   :  { %456 = vmatpush.msrb.mxu1 %v778_v5 }
  0x1a   :  { %457 = vmatpush.msrb.mxu1 %v786_v6 }
  0x80   :  { %v808_v8 = vpop.f32.mrf.mxu1  ;;  %v79_v9 = vpop.f32.mrf.mxu0 }
  0x81   :  { %v80_v11 = vadd.f32 %v813_v10, %v79_v9 }
  0x88   :  { %v128_v12 = vpop.f32.mrf.mxu1 }
  0x89   :  { %v131_v13 = vadd.f32 %v128_v12, %v80_v11 }
  0x8a   :  { %v840_v36 = vpop.f32.mrf.mxu2  ;;  %v82_v38 = vpop.f32.mrf.mxu0 }
  0x8b   :  { %v624_v14 = vmul.f32 -1.442695, %v131_v13  ;;  %v83_v39 = vadd.f32 %v813_v10, %v82_v38 }
  0x8d   :  { %649 = vpow2.f32 %v624_v14 }
  0x92   :  { %v842_v37 = vpop.f32.mrf.mxu2  ;;  %v85_v62 = vpop.f32.mrf.mxu0 }
  0x93   :  { %v650_v15 = vpop.eup %649  ;;  %v86_v63 = vadd.f32 %v813_v10, %v85_v62 }
  0x94   :  { %v135_v16 = vadd.f32 1.0, %v650_v15 }
  0x96   :  { %651 = vrcp.f32 %v135_v16  ;;  %v147_v20 = vand.u32 2147483648, %v135_v16  ;;  %v145_v22 = vand.u32 2147483647, %v135_v16  ;;  %vm141_vm2 = vweird.f32 %v135_v16 }
  0x98   :  { %v148_v24 = vor.u32 1.1754944e-38, %v147_v20  ;;  %vm146_vm4 = vcmp.eq.f32.partialorder %v145_v22, 8.507059e+37 }
  0x9c   :  { %v652_v17 = vpop.eup %651 }
  0x9d   :  { %v137_v18 = vmul.f32 %v652_v17, %v135_v16  ;;  %vm142_vm1 = vweird.f32 %v652_v17 }
  0x9e   :  { %vm143_vm3 = vmor %vm141_vm2, %vm142_vm1 }
  0x9f   :  { %v138_v19 = vsub.f32 1.0, %v137_v18 }
  0xa1   :  { %v139_v21 = vmul.f32 %v652_v17, %v138_v19 }
  0xa3   :  { %v140_v23 = vadd.f32 %v652_v17, %v139_v21 }
  0xa5   :  { %v144_v25 = vsel %vm143_vm3, %v652_v17, %v140_v23  ;;  %v27_v17 = vld [vmem:[%s916_s0 + $0x18] sm:$0xff] }
  0xa6   :  { %v149_v26 = vsel %vm146_vm4, %v148_v24, %v144_v25  ;;  %619 = vmatmul.msk.f32.gmra.mxu0 %vm37_vm0, %v27_v17 }
  0xa7   :  { %152 = vrot.lane.b32.xlu0 %v149_v26, %s714_s3  ;;  %v156_v27 = vmul.f32 0.0, %v149_v26 }
  0xaf   :  { %158 = vrot.lane.b32.xlu0 %v156_v27, %s715_s11 }
 0x119   :  { %v153_v30 = vpop.permute.xlu0 %152 }
 0x11a   :  { %v155_v31 = vmul.f32 %v153_v30, %v149_v26 }
 0x121   :  { %v159_v32 = vpop.permute.xlu0 %158 }
 0x122   :  { %v161_v33 = vadd.f32 %v159_v32, %v155_v31 }
 0x123   :  { %v88_v24 = vpop.f32.mrf.mxu0 }
 0x124   :  { %163 = vrot.lane.b32.xlu1 %v161_v33, %s716_s16  ;;  %v89_v25 = vadd.f32 %v813_v10, %v88_v24 }
 0x196   :  { %v164_v35 = vpop.permute.xlu1 %163 }
 0x197   :  { %625 = vmatmul.msk.f32.vlgmr.msrb.gmra.mxu2 %vm107_vm5, %v164_v35 }
 0x198   :  { %509 = vmatpush.msrb.mxu2 %v762_v2 }
 0x19a   :  { %510 = vmatpush.msrb.mxu2 %v771_v4 }
 0x19c   :  { %511 = vmatpush.msrb.mxu2 %v778_v5 }
 0x19e   :  { %512 = vmatpush.msrb.mxu2 %v786_v6 }
 0x21a   :  { %v184_v40 = vpop.f32.mrf.mxu2 }
 0x21b   :  { %v187_v41 = vadd.f32 %v184_v40, %v83_v39 }
 0x21d   :  { %v626_v42 = vmul.f32 -1.442695, %v187_v41 }
 0x21f   :  { %653 = vpow2.f32 %v626_v42 }
 0x225   :  { %v654_v43 = vpop.eup %653 }
 0x226   :  { %v191_v44 = vadd.f32 1.0, %v654_v43 }
 0x228   :  { %655 = vrcp.f32 %v191_v44  ;;  %v203_v48 = vand.u32 2147483648, %v191_v44  ;;  %v201_v50 = vand.u32 2147483647, %v191_v44  ;;  %vm197_vm7 = vweird.f32 %v191_v44 }
 0x22a   :  { %v204_v52 = vor.u32 1.1754944e-38, %v203_v48  ;;  %vm202_vm9 = vcmp.eq.f32.partialorder %v201_v50, 8.507059e+37  ;;  %v28_v48 = vld [vmem:[%s916_s0 + $0x20] sm:$0xff] }
 0x22b   :  { %620 = vmatmul.msk.f32.gmra.mxu0 %vm37_vm0, %v28_v48 }
 0x22e   :  { %v656_v45 = vpop.eup %655 }
 0x22f   :  { %v193_v46 = vmul.f32 %v656_v45, %v191_v44  ;;  %vm198_vm6 = vweird.f32 %v656_v45 }
 0x230   :  { %vm199_vm8 = vmor %vm197_vm7, %vm198_vm6 }
 0x231   :  { %v194_v47 = vsub.f32 1.0, %v193_v46 }
 0x233   :  { %v195_v49 = vmul.f32 %v656_v45, %v194_v47 }
 0x235   :  { %v196_v51 = vadd.f32 %v656_v45, %v195_v49 }
 0x237   :  { %v200_v53 = vsel %vm199_vm8, %v656_v45, %v196_v51 }
 0x238   :  { %v205_v54 = vsel %vm202_vm9, %v204_v52, %v200_v53 }
 0x239   :  { %212 = vrot.lane.b32.xlu2 %v205_v54, %s715_s11  ;;  %208 = vrot.lane.b32.xlu1 %v205_v54, %s714_s3 }
 0x293   :  { %v213_v55 = vpop.permute.xlu2 %212 }
 0x294   :  { %v215_v57 = vmul.f32 %v213_v55, %v161_v33 }
 0x2a8   :  { %v91_v50 = vpop.f32.mrf.mxu0 }
 0x2a9   :  { %v92_v51 = vadd.f32 %v813_v10, %v91_v50 }
 0x2ab   :  { %v209_v56 = vpop.permute.xlu1 %208 }
 0x2ac   :  { %v211_v58 = vmul.f32 %v209_v56, %v205_v54 }
 0x2ae   :  { %v216_v59 = vadd.f32 %v215_v57, %v211_v58 }
 0x2b0   :  { %218 = vrot.lane.b32.xlu2 %v216_v59, %s716_s16 }
 0x30a   :  { %v219_v61 = vpop.permute.xlu2 %218 }
 0x30b   :  { %627 = vmatmul.msk.f32.vlgmr.msra.gmra.mxu3 %vm107_vm5, %v219_v61 }
 0x38e   :  { %v239_v0 = vpop.f32.mrf.mxu3 }
 0x38f   :  { %v242_v1 = vadd.f32 %v239_v0, %v86_v63 }
 0x391   :  { %v628_v2 = vmul.f32 -1.442695, %v242_v1 }
 0x393   :  { %657 = vpow2.f32 %v628_v2 }
 0x399   :  { %v658_v3 = vpop.eup %657 }
 0x39a   :  { %v246_v4 = vadd.f32 1.0, %v658_v3 }
 0x39c   :  { %659 = vrcp.f32 %v246_v4  ;;  %v258_v9 = vand.u32 2147483648, %v246_v4  ;;  %v256_v12 = vand.u32 2147483647, %v246_v4  ;;  %vm252_vm11 = vweird.f32 %v246_v4 }
 0x39e   :  { %v259_v14 = vor.u32 1.1754944e-38, %v258_v9  ;;  %vm257_vm13 = vcmp.eq.f32.partialorder %v256_v12, 8.507059e+37 }
 0x3a2   :  { %v660_v5 = vpop.eup %659 }
 0x3a3   :  { %v248_v6 = vmul.f32 %v660_v5, %v246_v4  ;;  %vm253_vm10 = vweird.f32 %v660_v5 }
 0x3a4   :  { %vm254_vm12 = vmor %vm252_vm11, %vm253_vm10 }
 0x3a5   :  { %v249_v7 = vsub.f32 1.0, %v248_v6 }
 0x3a7   :  { %v250_v11 = vmul.f32 %v660_v5, %v249_v7 }
 0x3a9   :  { %v251_v13 = vadd.f32 %v660_v5, %v250_v11  ;;  %v95_v11 = vadd.f32 %v813_v10, %v808_v8 }
 0x3ab   :  { %v255_v15 = vsel %vm254_vm12, %v660_v5, %v251_v13 }
 0x3ac   :  { %v260_v16 = vsel %vm257_vm13, %v259_v14, %v255_v15 }
 0x3ad   :  { %267 = vrot.lane.b32.xlu1 %v260_v16, %s715_s11  ;;  %263 = vrot.lane.b32.xlu0 %v260_v16, %s714_s3 }
 0x41f   :  { %v268_v18 = vpop.permute.xlu1 %267  ;;  %v264_v19 = vpop.permute.xlu0 %263 }
 0x420   :  { %v270_v20 = vmul.f32 %v268_v18, %v216_v59  ;;  %v266_v21 = vmul.f32 %v264_v19, %v260_v16 }
 0x422   :  { %v271_v22 = vadd.f32 %v270_v20, %v266_v21 }
 0x424   :  { %273 = vrot.lane.b32.xlu2 %v271_v22, %s716_s16 }
 0x47e   :  { %v274_v23 = vpop.permute.xlu2 %273 }
 0x47f   :  { %629 = vmatmul.msk.f32.vlgmr.msra.gmra.mxu1 %vm107_vm5, %v274_v23 }
 0x4fc   :  { %v294_v26 = vpop.f32.mrf.mxu1 }
 0x4fd   :  { %v297_v27 = vadd.f32 %v294_v26, %v89_v25 }
 0x4ff   :  { %v630_v28 = vmul.f32 -1.442695, %v297_v27 }
 0x501   :  { %661 = vpow2.f32 %v630_v28 }
 0x507   :  { %v662_v29 = vpop.eup %661 }
 0x508   :  { %v301_v30 = vadd.f32 1.0, %v662_v29 }
 0x50a   :  { %663 = vrcp.f32 %v301_v30  ;;  %v313_v34 = vand.u32 2147483648, %v301_v30  ;;  %v311_v38 = vand.u32 2147483647, %v301_v30  ;;  %vm307_vm15 = vweird.f32 %v301_v30 }
 0x50c   :  { %v314_v40 = vor.u32 1.1754944e-38, %v313_v34  ;;  %vm312_vm2 = vcmp.eq.f32.partialorder %v311_v38, 8.507059e+37 }
 0x510   :  { %v664_v31 = vpop.eup %663 }
 0x511   :  { %v303_v32 = vmul.f32 %v664_v31, %v301_v30  ;;  %vm308_vm14 = vweird.f32 %v664_v31 }
 0x512   :  { %vm309_vm1 = vmor %vm307_vm15, %vm308_vm14 }
 0x513   :  { %v304_v33 = vsub.f32 1.0, %v303_v32  ;;  %v98_v32 = vadd.f32 %v813_v10, %v840_v36 }
 0x515   :  { %v305_v35 = vmul.f32 %v664_v31, %v304_v33 }
 0x517   :  { %v306_v39 = vadd.f32 %v664_v31, %v305_v35 }
 0x519   :  { %v310_v41 = vsel %vm309_vm1, %v664_v31, %v306_v39 }
 0x51a   :  { %v315_v42 = vsel %vm312_vm2, %v314_v40, %v310_v41 }
 0x51b   :  { %322 = vrot.lane.b32.xlu1 %v315_v42, %s715_s11  ;;  %318 = vrot.lane.b32.xlu0 %v315_v42, %s714_s3 }
 0x58d   :  { %v323_v43 = vpop.permute.xlu1 %322  ;;  %v319_v44 = vpop.permute.xlu0 %318 }
 0x58e   :  { %v325_v45 = vmul.f32 %v323_v43, %v271_v22  ;;  %v321_v46 = vmul.f32 %v319_v44, %v315_v42 }
 0x590   :  { %v326_v47 = vadd.f32 %v325_v45, %v321_v46 }
 0x592   :  { %328 = vrot.lane.b32.xlu2 %v326_v47, %s716_s16 }
 0x5ec   :  { %v329_v49 = vpop.permute.xlu2 %328 }
 0x5ed   :  { %631 = vmatmul.msk.f32.vlgmr.msra.gmra.mxu2 %vm107_vm5, %v329_v49 }
 0x670   :  { %v349_v52 = vpop.f32.mrf.mxu2 }
 0x671   :  { %v352_v53 = vadd.f32 %v349_v52, %v92_v51 }
 0x673   :  { %v632_v54 = vmul.f32 -1.442695, %v352_v53 }
 0x675   :  { %665 = vpow2.f32 %v632_v54 }
 0x67b   :  { %v666_v55 = vpop.eup %665 }
 0x67c   :  { %v356_v56 = vadd.f32 1.0, %v666_v55  ;;  %v101_v55 = vadd.f32 %v813_v10, %v842_v37  ;;  %v555_v37 = vld [vmem:[%s920_s4 + $0x18] sm:$0xff] }
 0x67d   :  { %577 = vmatpush.msra.mxu3 %v555_v37 }
 0x67e   :  { %667 = vrcp.f32 %v356_v56  ;;  %v368_v60 = vand.u32 2147483648, %v356_v56  ;;  %v366_v62 = vand.u32 2147483647, %v356_v56  ;;  %vm362_vm0 = vweird.f32 %v356_v56 }
 0x680   :  { %v369_v0 = vor.u32 1.1754944e-38, %v368_v60  ;;  %vm367_vm6 = vcmp.eq.f32.partialorder %v366_v62, 8.507059e+37 }
 0x684   :  { %v668_v57 = vpop.eup %667 }
 0x685   :  { %v358_v58 = vmul.f32 %v668_v57, %v356_v56  ;;  %vm363_vm3 = vweird.f32 %v668_v57 }
 0x686   :  { %vm364_vm4 = vmor %vm362_vm0, %vm363_vm3  ;;  %vm585_vm0 = vcmask 80896  }
 0x687   :  { %v359_v59 = vsub.f32 1.0, %v358_v58 }
 0x689   :  { %v360_v61 = vmul.f32 %v668_v57, %v359_v59 }
 0x68b   :  { %v361_v63 = vadd.f32 %v668_v57, %v360_v61 }
 0x68d   :  { %v365_v1 = vsel %vm364_vm4, %v668_v57, %v361_v63 }
 0x68e   :  { %v370_v2 = vsel %vm367_vm6, %v369_v0, %v365_v1 }
 0x68f   :  { %377 = vrot.lane.b32.xlu1 %v370_v2, %s715_s11  ;;  %373 = vrot.lane.b32.xlu0 %v370_v2, %s714_s3 }
 0x701   :  { %v378_v3 = vpop.permute.xlu1 %377  ;;  %v374_v4 = vpop.permute.xlu0 %373 }
 0x702   :  { %v380_v5 = vmul.f32 %v378_v3, %v326_v47  ;;  %v376_v6 = vmul.f32 %v374_v4, %v370_v2 }
 0x704   :  { %v381_v7 = vadd.f32 %v380_v5, %v376_v6  ;;  %v554_v6 = vld [vmem:[%s920_s4 + $0x10] sm:$0xff] }
 0x705   :  { %578 = vmatpush.msra.mxu3 %v554_v6 }
 0x706   :  { %383 = vrot.lane.b32.xlu2 %v381_v7, %s716_s16 }
 0x760   :  { %v384_v9 = vpop.permute.xlu2 %383 }
 0x761   :  { %633 = vmatmul.msk.f32.vlgmr.msrb.gmra.mxu3 %vm107_vm5, %v384_v9  ;;  %v552_v9 = vld [vmem:[%s920_s4] sm:$0xff] }
 0x7e4   :  { %v404_v12 = vpop.f32.mrf.mxu3 }
 0x7e5   :  { %v407_v13 = vadd.f32 %v404_v12, %v95_v11 }
 0x7e7   :  { %v634_v14 = vmul.f32 -1.442695, %v407_v13 }
 0x7e9   :  { %669 = vpow2.f32 %v634_v14 }
 0x7ef   :  { %v670_v15 = vpop.eup %669 }
 0x7f0   :  { %v411_v16 = vadd.f32 1.0, %v670_v15 }
 0x7f2   :  { %671 = vrcp.f32 %v411_v16  ;;  %v423_v20 = vand.u32 2147483648, %v411_v16  ;;  %v421_v22 = vand.u32 2147483647, %v411_v16  ;;  %vm417_vm8 = vweird.f32 %v411_v16 }
 0x7f4   :  { %v424_v24 = vor.u32 1.1754944e-38, %v423_v20  ;;  %vm422_vm10 = vcmp.eq.f32.partialorder %v421_v22, 8.507059e+37  ;;  %v648_v20 = vld [vmem:[%s921_s5] ss:$0 sm:$0xff] }
 0x7f8   :  { %v672_v17 = vpop.eup %671 }
 0x7f9   :  { %v413_v18 = vmul.f32 %v672_v17, %v411_v16  ;;  %vm418_vm7 = vweird.f32 %v672_v17 }
 0x7fa   :  { %vm419_vm9 = vmor %vm417_vm8, %vm418_vm7 }
 0x7fb   :  { %v414_v19 = vsub.f32 1.0, %v413_v18 }
 0x7fd   :  { %v415_v21 = vmul.f32 %v672_v17, %v414_v19 }
 0x7ff   :  { %v416_v23 = vadd.f32 %v672_v17, %v415_v21 }
 0x801   :  { %v420_v25 = vsel %vm419_vm9, %v672_v17, %v416_v23 }
 0x802   :  { %v425_v8 = vsel %vm422_vm10, %v424_v24, %v420_v25 }
 0x803   :  { %432 = vrot.lane.b32.xlu1 %v425_v8, %s715_s11  ;;  %428 = vrot.lane.b32.xlu0 %v425_v8, %s714_s3 }
 0x875   :  { %v433_v26 = vpop.permute.xlu1 %432  ;;  %v429_v27 = vpop.permute.xlu0 %428 }
 0x876   :  { %v435_v28 = vmul.f32 %v433_v26, %v381_v7  ;;  %v431_v29 = vmul.f32 %v429_v27, %v425_v8  ;;  %v553_v7 = vld [vmem:[%s920_s4 + $0x8] sm:$0xff]  ;;  %s717_s4 = smov [#allocation2]  }
 0x877   :  { %579 = vmatpush.msra.mxu3 %v553_v7  ;;  %s605_s5 = sshll.u32 %s717_s4, 4  ;;  %s606_s5 = int_to_ptr.vmem [resolvable:$true] %s605_s5 }
 0x878   :  { %v436_v30 = vadd.f32 %v435_v28, %v431_v29 }
 0x879   :  { %580 = vmatpush.msra.mxu3 %v552_v9 }
 0x87a   :  { %438 = vrot.lane.b32.xlu2 %v436_v30, %s716_s16 }
 0x8d4   :  { %v439_v31 = vpop.permute.xlu2 %438 }
 0x8d5   :  { %635 = vmatmul.msk.f32.vlgmr.msrb.gmra.mxu1 %vm107_vm5, %v439_v31 }
 0x952   :  { %v459_v33 = vpop.f32.mrf.mxu1 }
 0x953   :  { %v462_v34 = vadd.f32 %v459_v33, %v98_v32 }
 0x955   :  { %v636_v35 = vmul.f32 -1.442695, %v462_v34 }
 0x957   :  { %673 = vpow2.f32 %v636_v35 }
 0x95d   :  { %v674_v38 = vpop.eup %673 }
 0x95e   :  { %v466_v39 = vadd.f32 1.0, %v674_v38 }
 0x960   :  { %675 = vrcp.f32 %v466_v39  ;;  %v478_v43 = vand.u32 2147483648, %v466_v39  ;;  %v476_v45 = vand.u32 2147483647, %v466_v39  ;;  %vm472_vm12 = vweird.f32 %v466_v39 }
 0x962   :  { %v479_v47 = vor.u32 1.1754944e-38, %v478_v43  ;;  %vm477_vm14 = vcmp.eq.f32.partialorder %v476_v45, 8.507059e+37 }
 0x966   :  { %v676_v40 = vpop.eup %675 }
 0x967   :  { %v468_v41 = vmul.f32 %v676_v40, %v466_v39  ;;  %vm473_vm11 = vweird.f32 %v676_v40 }
 0x968   :  { %vm474_vm13 = vmor %vm472_vm12, %vm473_vm11 }
 0x969   :  { %v469_v42 = vsub.f32 1.0, %v468_v41 }
 0x96b   :  { %v470_v44 = vmul.f32 %v676_v40, %v469_v42 }
 0x96d   :  { %v471_v46 = vadd.f32 %v676_v40, %v470_v44 }
 0x96f   :  { %v475_v48 = vsel %vm474_vm13, %v676_v40, %v471_v46 }
 0x970   :  { %v480_v36 = vsel %vm477_vm14, %v479_v47, %v475_v48 }
 0x971   :  { %487 = vrot.lane.b32.xlu1 %v480_v36, %s715_s11  ;;  %483 = vrot.lane.b32.xlu0 %v480_v36, %s714_s3 }
 0x9e3   :  { %v488_v49 = vpop.permute.xlu1 %487  ;;  %v484_v50 = vpop.permute.xlu0 %483 }
 0x9e4   :  { %v490_v51 = vmul.f32 %v488_v49, %v436_v30  ;;  %v486_v52 = vmul.f32 %v484_v50, %v480_v36 }
 0x9e6   :  { %v491_v53 = vadd.f32 %v490_v51, %v486_v52 }
 0x9e8   :  { %493 = vrot.lane.b32.xlu2 %v491_v53, %s716_s16 }
 0xa42   :  { %v494_v54 = vpop.permute.xlu2 %493 }
 0xa43   :  { %637 = vmatmul.msk.f32.vlgmr.msrb.gmra.mxu2 %vm107_vm5, %v494_v54 }
 0xac6   :  { %v514_v56 = vpop.f32.mrf.mxu2 }
 0xac7   :  { %v517_v57 = vadd.f32 %v514_v56, %v101_v55 }
 0xac9   :  { %v638_v58 = vmul.f32 -1.442695, %v517_v57 }
 0xacb   :  { %677 = vpow2.f32 %v638_v58 }
 0xad1   :  { %v678_v59 = vpop.eup %677 }
 0xad2   :  { %v521_v60 = vadd.f32 1.0, %v678_v59 }
 0xad4   :  { %679 = vrcp.f32 %v521_v60  ;;  %v533_v0 = vand.u32 2147483648, %v521_v60  ;;  %v531_v2 = vand.u32 2147483647, %v521_v60  ;;  %vm527_vm1 = vweird.f32 %v521_v60 }
 0xad6   :  { %v534_v4 = vor.u32 1.1754944e-38, %v533_v0  ;;  %vm532_vm3 = vcmp.eq.f32.partialorder %v531_v2, 8.507059e+37 }
 0xada   :  { %v680_v61 = vpop.eup %679 }
 0xadb   :  { %v523_v62 = vmul.f32 %v680_v61, %v521_v60  ;;  %vm528_vm15 = vweird.f32 %v680_v61 }
 0xadc   :  { %vm529_vm2 = vmor %vm527_vm1, %vm528_vm15 }
 0xadd   :  { %v524_v63 = vsub.f32 1.0, %v523_v62 }
 0xadf   :  { %v525_v1 = vmul.f32 %v680_v61, %v524_v63 }
 0xae1   :  { %v526_v3 = vadd.f32 %v680_v61, %v525_v1 }
 0xae3   :  { %v530_v5 = vsel %vm529_vm2, %v680_v61, %v526_v3 }
 0xae4   :  { %v535_v10 = vsel %vm532_vm3, %v534_v4, %v530_v5 }
 0xae5   :  { %548 = vrot.lane.b32.xlu2 %v535_v10, %s716_s16  ;;  %542 = vrot.lane.b32.xlu1 %v535_v10, %s715_s11 }
 0xae6   :  { %538 = vrot.lane.b32.xlu0 %v535_v10, %s714_s3 }
 0xb3f   :  { %v549_v17 = vpop.permute.xlu2 %548 }
 0xb57   :  { %v543_v11 = vpop.permute.xlu1 %542 }
 0xb58   :  { %v545_v12 = vmul.f32 %v543_v11, %v491_v53  ;;  %v539_v13 = vpop.permute.xlu0 %538 }
 0xb59   :  { %v541_v14 = vmul.f32 %v539_v13, %v535_v10 }
 0xb5b   :  { %v546_v15 = vadd.f32 %v545_v12, %v541_v14 }
 0xb5d   :  { %681 = vtanh.f32 %v546_v15 }
 0xb63   :  { %v682_v16 = vpop.eup %681 }
 0xb64   :  { %v551_v18 = vmul.f32 %v682_v16, %v549_v17 }
 0xb66   :  { %561 = vrot.lane.b32.xlu0 %v551_v18, %s716_s16 }
 0xbd8   :  { %v562_v19 = vpop.permute.xlu0 %561 }
 0xbd9   :  { %639 = vmatmul.msk.f32.vlgmr.msra.gmra.mxu3 %vm107_vm5, %v562_v19 }
 0xc5c   :  { %v582_v21 = vpop.f32.mrf.mxu3 }
 0xc5d   :  { %v583_v22 = vadd.f32 %v648_v20, %v582_v21 }
 0xc5f   :  { %v586_v23 = vsel %vm585_vm0, %v583_v22, -inf }
 0xc60   :  { %587 = vmax.xlane.f32.xlu1 %v586_v23 }
 0xcd3   :  { %v588_v24 = vpop.xlane.xlu1 %587 }
 0xcd4   :  { %v589_v25 = vsub.f32 %v583_v22, %v588_v24 }
 0xcd6   :  { %v590_v8 = vmul.f32 1.442695, %v589_v25 }
 0xcd8   :  { %683 = vpow2.f32 %v590_v8 }
 0xcde   :  { %v684_v26 = vpop.eup %683 }
 0xcdf   :  { %v592_v27 = vsel %vm585_vm0, %v684_v26, 0.0 }
 0xce0   :  { %593 = vadd.xlane.f32.xlu2 %v592_v27 }
 0xd53   :  { %v594_v28 = vpop.xlane.xlu2 %593 }
 0xd54   :  { %685 = vlog2.f32 %v594_v28 }
 0xd5a   :  { %v686_v29 = vpop.eup %685 }
 0xd5b   :  { %v596_v30 = vmul.f32 0.6931472, %v686_v29 }
 0xd5d   :  { %v597_v31 = vadd.f32 %v596_v30, %v588_v24 }
 0xd5f   :  { %v598_v32 = vsub.f32 %v583_v22, %v597_v31 }
 0xd61   :  { %599 = vst.msk [vmem:[#allocation2] sm:$0xff] %vm585_vm0, %v598_v32 }
 0xd62   :  { %610 = dma.vmem_to_hbm [thread:$0]  %s606_s5, 128, %s608_s10, [#allocation3]  }
 0xd63   :  { %711 = dma.done.wait [#allocation3], 128  }
 0xd64   :  { %712 = vsyncadd [#allocation3], 4294967168 }
 0xd65   :  { %615 = vsyncpa [#allocation3], 1 }

</bundles_post_ra>
